<compile_context>
chip_gen: v5e
topology: v5e:2x2
jax: 0.10.0
libtpu: 0.0.40
codegen_flags: <defaults>
</compile_context>

<pallas_src>
import functools

import jax
import jax.numpy as jnp
from jax.experimental import pallas as pl
from jax.experimental.pallas import tpu as pltpu

_LANES = 128            # TPU lane width (last dim of every block)
_SUB = 8                # f32 sublane granularity (one vreg = (8, 128))
_TILE = _SUB * _LANES   # elements per (8, 128) tile
_MAX_BLOCK_ROWS = 1024  # rows per grid step (1024 * 128 * 4 B = 512 KiB f32)
_MAX_SPLITS = 2         # leading "parallel" axis: per-TensorCore partials (v7x)


def _tversky_kernel(logits_ref, mask_ref, out_ref,
                    acc_pg_ref, acc_p_ref, acc_g_ref,
                    *, blocks_per_split, total_blocks, num_splits,
                    valid_rows_last):
    """Accumulate per-split partial sums of (p*g, p, g) over (rows, 128) blocks."""
    s = pl.program_id(0)                 # split index ("parallel" axis)
    b = pl.program_id(1)                 # block within split ("arbitrary" axis)
    block_rows, lanes = logits_ref.shape
    g_idx = s * blocks_per_split + b     # global block index (traced scalar)

    has_partial_last = valid_rows_last < block_rows          # static
    has_overreach = num_splits * blocks_per_split > total_blocks  # static

    # Zero the three single-vreg accumulators at the start of every split.
    @pl.when(b == 0)
    def _():
        acc_pg_ref[...] = jnp.zeros_like(acc_pg_ref)
        acc_p_ref[...] = jnp.zeros_like(acc_p_ref)
        acc_g_ref[...] = jnp.zeros_like(acc_g_ref)

    def accumulate(valid_rows):
        x = logits_ref[...].astype(jnp.float32)
        g = mask_ref[...].astype(jnp.float32)
        # jax.nn.sigmoid lowers to a single stable EUP op; the kernel is
        # HBM-bound on v5e/v6e with f32 inputs.
        # TODO(synk): on v7x re-derive the binding unit from a bundle dump; if
        # EUP saturates, lower sigmoid as exp(-x) + pl.reciprocal(approx=True),
        # and consider a bf16 sigmoid path for bf16 inputs on v6e/v7x.
        p = jax.nn.sigmoid(x)
        if valid_rows is not None:
            # Mask garbage rows of the boundary block (only reached for that
            # single block). Mask BEFORE the multiply so NaN garbage can never
            # leak into the sums.
            row_ids = jax.lax.broadcasted_iota(jnp.int32, (block_rows, lanes), 0)
            keep = row_ids < valid_rows
            p = jnp.where(keep, p, 0.0)
            g = jnp.where(keep, g, 0.0)
        pg = p * g
        # Fold the (block_rows, 128) values into one (8, 128) vreg with a
        # leading-axis reduction: a vreg-boundary-aligned reshape (no relayout)
        # followed by pure vreg-wise VPU adds -- no XLU, and only ~3 accumulator
        # loads/stores per grid step instead of ~3 * block_rows/8.
        r = block_rows // _SUB
        acc_pg_ref[...] += jnp.sum(pg.reshape(r, _SUB, lanes), axis=0)
        acc_p_ref[...] += jnp.sum(p.reshape(r, _SUB, lanes), axis=0)
        acc_g_ref[...] += jnp.sum(g.reshape(r, _SUB, lanes), axis=0)

    if not (has_partial_last or has_overreach):
        # Every block (including the last) is fully valid: no masking anywhere.
        accumulate(None)
    else:
        @pl.when(g_idx < total_blocks - 1)
        def _():
            accumulate(None)

        @pl.when(g_idx == total_blocks - 1)
        def _():
            accumulate(valid_rows_last if has_partial_last else None)
        # g_idx > total_blocks - 1: overreach block from the ceil split -> skip.

    # Emit this split's partial sums; the reduction to scalars and the Tversky
    # ratio happen in the wrapper (enables the v7x 2-core split + ragged tail).
    @pl.when(b == blocks_per_split - 1)
    def _():
        out_ref[0, 0] = acc_pg_ref[...]
        out_ref[0, 1] = acc_p_ref[...]
        out_ref[0, 2] = acc_g_ref[...]


def tversky_loss(logits, ground_truth_mask, alpha=0.7, beta=0.3, smooth=1e-6):
    """Pallas TPU implementation of TverskyLoss.forward (scalar loss).

    Inputs are streamed in their native dtypes and cast per block inside the
    kernel. Pass the ground-truth mask in a narrow dtype (bool / int8 / bf16)
    when possible to shrink its HBM stream; do NOT pre-cast to f32 here.
    """
    flat_logits = logits.reshape(-1)            # metadata-only flatten
    flat_mask = ground_truth_mask.reshape(-1)
    n = flat_logits.shape[0]

    # The kernel covers the 1024-aligned prefix; the < 1024-element ragged tail
    # is folded in with plain JAX below. No jnp.pad => no full-array HBM copy.
    n_main = (n // _TILE) * _TILE

    tp = jnp.float32(0.0)
    sum_p = jnp.float32(0.0)
    sum_g = jnp.float32(0.0)

    if n_main > 0:
        if n_main == n:
            main_logits, main_mask = flat_logits, flat_mask   # free-reshape path
        else:
            # Contiguous prefix slice (XLA can typically alias it; verify in
            # xprof that no relayout copy is inserted).
            main_logits = flat_logits[:n_main]
            main_mask = flat_mask[:n_main]
        rows = n_main // _LANES                 # multiple of 8 by construction
        logits_2d = main_logits.reshape(rows, _LANES)
        mask_2d = main_mask.reshape(rows, _LANES)

        block_rows = min(_MAX_BLOCK_ROWS, rows)           # multiple of 8
        total_blocks = pl.cdiv(rows, block_rows)
        valid_rows_last = rows - (total_blocks - 1) * block_rows
        num_splits = min(_MAX_SPLITS, total_blocks)
        blocks_per_split = pl.cdiv(total_blocks, num_splits)

        def idx_map(s, b):
            # Clamp overreach blocks (from the ceil split) onto a valid block;
            # their contribution is skipped inside the kernel.
            return jnp.minimum(s * blocks_per_split + b, total_blocks - 1), 0

        kernel = functools.partial(
            _tversky_kernel,
            blocks_per_split=blocks_per_split,
            total_blocks=total_blocks,
            num_splits=num_splits,
            valid_rows_last=valid_rows_last)

        partials = pl.pallas_call(
            kernel,
            out_shape=jax.ShapeDtypeStruct((num_splits, 3, _SUB, _LANES),
                                           jnp.float32),
            grid_spec=pltpu.PrefetchScalarGridSpec(
                num_scalar_prefetch=0,
                grid=(num_splits, blocks_per_split),
                in_specs=[
                    pl.BlockSpec((block_rows, _LANES), idx_map),
                    pl.BlockSpec((block_rows, _LANES), idx_map),
                ],
                # TODO(synk): if xprof on v7x still shows exposed DMA at step
                # boundaries, add pipeline_mode=pl.Buffered(3) to the in_specs.
                out_specs=pl.BlockSpec((1, 3, _SUB, _LANES),
                                       lambda s, b: (s, 0, 0, 0)),
                scratch_shapes=[
                    pltpu.VMEM((_SUB, _LANES), jnp.float32),  # sum(p * g)
                    pltpu.VMEM((_SUB, _LANES), jnp.float32),  # sum(p)
                    pltpu.VMEM((_SUB, _LANES), jnp.float32),  # sum(g)
                ],
            ),
            compiler_params=pltpu.CompilerParams(
                dimension_semantics=("parallel", "arbitrary")),
        )(logits_2d, mask_2d)

        sums = jnp.sum(partials, axis=(0, 2, 3))   # tiny wrapper-side combine
        tp = tp + sums[0]
        sum_p = sum_p + sums[1]
        sum_g = sum_g + sums[2]

    if n_main < n:
        # Ragged tail (< 1024 elements): negligible plain-JAX fixup.
        tail_p = jax.nn.sigmoid(flat_logits[n_main:].astype(jnp.float32))
        tail_g = flat_mask[n_main:].astype(jnp.float32)
        tp = tp + jnp.sum(tail_p * tail_g)
        sum_p = sum_p + jnp.sum(tail_p)
        sum_g = sum_g + jnp.sum(tail_g)

    # For binary masks: fp = sum(p*(1-g)) = sum_p - tp, fn = sum((1-p)*g) =
    # sum_g - tp. Mild f32 cancellation vs the reference formulation is
    # negligible at these sizes (per-block partial sums limit the error).
    fp = sum_p - tp
    fn = sum_g - tp
    tversky_index = (tp + smooth) / (tp + alpha * fp + beta * fn + smooth)
    return 1.0 - tversky_index


def _reference_tversky(logits, mask, alpha=0.7, beta=0.3, smooth=1e-6):
    p = jax.nn.sigmoid(logits.astype(jnp.float32)).reshape(-1)
    g = mask.astype(jnp.float32).reshape(-1)
    tp = jnp.sum(p * g)
    fp = jnp.sum(p * (1.0 - g))
    fn = jnp.sum((1.0 - p) * g)
    return 1.0 - (tp + smooth) / (tp + alpha * fp + beta * fn + smooth)


if __name__ == "__main__":
    key = jax.random.PRNGKey(0)
    k1, k2, k3, k4 = jax.random.split(key, 4)

    # Primary small segmentation-style example: (N, C, H, W) = (2, 4, 16, 16).
    logits = jax.random.normal(k1, (2, 4, 16, 16), dtype=jnp.float32)
    mask = (jax.random.uniform(k2, (2, 4, 16, 16)) > 0.5).astype(jnp.float32)
    loss = jax.block_until_ready(tversky_loss(logits, mask))
    ref = _reference_tversky(logits, mask)
    assert jnp.allclose(loss, ref, atol=1e-5, rtol=1e-5), (loss, ref)

    # Ragged case: exercises the partial last block (rows % block_rows != 0),
    # the 2-way split combine, the prefix slice, and the <1024-element JAX tail.
    logits2 = jax.random.normal(k3, (1, 2, 241, 320), dtype=jnp.float32)
    mask2 = (jax.random.uniform(k4, (1, 2, 241, 320)) > 0.5).astype(jnp.float32)
    loss2 = jax.block_until_ready(tversky_loss(logits2, mask2))
    ref2 = _reference_tversky(logits2, mask2)
    assert jnp.allclose(loss2, ref2, atol=1e-4, rtol=1e-4), (loss2, ref2)

    print("KERNEL_OK")
</pallas_src>

<mosaic_0001>
module attributes {stable_mosaic.version = 11 : i64} {
  func.func @_tversky_kernel(%arg0: i32, %arg1: i32, %arg2: memref<16x128xf32, #tpu.memory_space<vmem>>, %arg3: memref<16x128xf32, #tpu.memory_space<vmem>>, %arg4: memref<1x3x8x128xf32, #tpu.memory_space<vmem>>, %arg5: memref<8x128xf32, #tpu.memory_space<vmem>>, %arg6: memref<8x128xf32, #tpu.memory_space<vmem>>, %arg7: memref<8x128xf32, #tpu.memory_space<vmem>>) attributes {dimension_semantics = [#tpu.dimension_semantics<parallel>, #tpu.dimension_semantics<arbitrary>], iteration_bounds = array<i64: 1, 1>, scalar_prefetch = 0 : i64, scratch_operands = 3 : i64, tpu.core_type = #tpu.core_type<tc>, window_params = [{transform_indices = @transform_0, window_bounds = array<i64: 16, 128>}, {transform_indices = @transform_1, window_bounds = array<i64: 16, 128>}, {transform_indices = @transform_2, window_bounds = array<i64: 1, 3, 8, 128>}]} {
    %c0_i32 = arith.constant 0 : i32
    %0 = arith.cmpi eq, %arg1, %c0_i32 : i32
    %1 = arith.extui %0 : i1 to i32
    %c0_i32_0 = arith.constant 0 : i32
    %2 = arith.cmpi ne, %1, %c0_i32_0 : i32
    scf.if %2 {
      %cst_21 = arith.constant 0.000000e+00 : f32
      %29 = vector.broadcast %cst_21 : f32 to vector<8x128xf32>
      %c0_22 = arith.constant 0 : index
      %c0_23 = arith.constant 0 : index
      %30 = vector.load %arg5[%c0_22, %c0_23] : memref<8x128xf32, #tpu.memory_space<vmem>>, vector<8x128xf32>
      tpu.vector_store %arg5[%c0_22, %c0_23], %29 {strides = array<i32>} : memref<8x128xf32, #tpu.memory_space<vmem>>, vector<8x128xf32>,
      %cst_24 = arith.constant 0.000000e+00 : f32
      %31 = vector.broadcast %cst_24 : f32 to vector<8x128xf32>
      %c0_25 = arith.constant 0 : index
      %c0_26 = arith.constant 0 : index
      %32 = vector.load %arg6[%c0_25, %c0_26] : memref<8x128xf32, #tpu.memory_space<vmem>>, vector<8x128xf32>
      tpu.vector_store %arg6[%c0_25, %c0_26], %31 {strides = array<i32>} : memref<8x128xf32, #tpu.memory_space<vmem>>, vector<8x128xf32>,
      %cst_27 = arith.constant 0.000000e+00 : f32
      %33 = vector.broadcast %cst_27 : f32 to vector<8x128xf32>
      %c0_28 = arith.constant 0 : index
      %c0_29 = arith.constant 0 : index
      %34 = vector.load %arg7[%c0_28, %c0_29] : memref<8x128xf32, #tpu.memory_space<vmem>>, vector<8x128xf32>
      tpu.vector_store %arg7[%c0_28, %c0_29], %33 {strides = array<i32>} : memref<8x128xf32, #tpu.memory_space<vmem>>, vector<8x128xf32>,
    } else {
    }
    %c0 = arith.constant 0 : index
    %c0_1 = arith.constant 0 : index
    %3 = vector.load %arg2[%c0, %c0_1] : memref<16x128xf32, #tpu.memory_space<vmem>>, vector<16x128xf32>
    %c0_2 = arith.constant 0 : index
    %c0_3 = arith.constant 0 : index
    %4 = vector.load %arg3[%c0_2, %c0_3] : memref<16x128xf32, #tpu.memory_space<vmem>>, vector<16x128xf32>
    %5 = arith.negf %3 : vector<16x128xf32>
    %6 = math.exp %5 : vector<16x128xf32>
    %cst = arith.constant 1.000000e+00 : f32
    %7 = vector.broadcast %cst : f32 to vector<16x128xf32>
    %8 = arith.addf %7, %6 : vector<16x128xf32>
    %9 = arith.divf %7, %8 : vector<16x128xf32>
    %10 = arith.mulf %9, %4 : vector<16x128xf32>
    %c0_4 = arith.constant 0 : index
    %c0_5 = arith.constant 0 : index
    %11 = vector.load %arg5[%c0_4, %c0_5] : memref<8x128xf32, #tpu.memory_space<vmem>>, vector<8x128xf32>
    %12 = vector.shape_cast %10 : vector<16x128xf32> to vector<2x8x128xf32>
    %cst_6 = arith.constant dense<0.000000e+00> : vector<8x128xf32>
    %13 = vector.multi_reduction <add>, %12, %cst_6 [0] : vector<2x8x128xf32> to vector<8x128xf32>
    %14 = arith.addf %11, %13 : vector<8x128xf32>
    %c0_7 = arith.constant 0 : index
    %c0_8 = arith.constant 0 : index
    %15 = vector.load %arg5[%c0_7, %c0_8] : memref<8x128xf32, #tpu.memory_space<vmem>>, vector<8x128xf32>
    tpu.vector_store %arg5[%c0_7, %c0_8], %14 {strides = array<i32>} : memref<8x128xf32, #tpu.memory_space<vmem>>, vector<8x128xf32>,
    %c0_9 = arith.constant 0 : index
    %c0_10 = arith.constant 0 : index
    %16 = vector.load %arg6[%c0_9, %c0_10] : memref<8x128xf32, #tpu.memory_space<vmem>>, vector<8x128xf32>
    %17 = vector.shape_cast %9 : vector<16x128xf32> to vector<2x8x128xf32>
    %cst_11 = arith.constant dense<0.000000e+00> : vector<8x128xf32>
    %18 = vector.multi_reduction <add>, %17, %cst_11 [0] : vector<2x8x128xf32> to vector<8x128xf32>
    %19 = arith.addf %16, %18 : vector<8x128xf32>
    %c0_12 = arith.constant 0 : index
    %c0_13 = arith.constant 0 : index
    %20 = vector.load %arg6[%c0_12, %c0_13] : memref<8x128xf32, #tpu.memory_space<vmem>>, vector<8x128xf32>
    tpu.vector_store %arg6[%c0_12, %c0_13], %19 {strides = array<i32>} : memref<8x128xf32, #tpu.memory_space<vmem>>, vector<8x128xf32>,
    %c0_14 = arith.constant 0 : index
    %c0_15 = arith.constant 0 : index
    %21 = vector.load %arg7[%c0_14, %c0_15] : memref<8x128xf32, #tpu.memory_space<vmem>>, vector<8x128xf32>
    %22 = vector.shape_cast %4 : vector<16x128xf32> to vector<2x8x128xf32>
    %cst_16 = arith.constant dense<0.000000e+00> : vector<8x128xf32>
    %23 = vector.multi_reduction <add>, %22, %cst_16 [0] : vector<2x8x128xf32> to vector<8x128xf32>
    %24 = arith.addf %21, %23 : vector<8x128xf32>
    %c0_17 = arith.constant 0 : index
    %c0_18 = arith.constant 0 : index
    %25 = vector.load %arg7[%c0_17, %c0_18] : memref<8x128xf32, #tpu.memory_space<vmem>>, vector<8x128xf32>
    tpu.vector_store %arg7[%c0_17, %c0_18], %24 {strides = array<i32>} : memref<8x128xf32, #tpu.memory_space<vmem>>, vector<8x128xf32>,
    %c0_i32_19 = arith.constant 0 : i32
    %26 = arith.cmpi eq, %arg1, %c0_i32_19 : i32
    %27 = arith.extui %26 : i1 to i32
    %c0_i32_20 = arith.constant 0 : i32
    %28 = arith.cmpi ne, %27, %c0_i32_20 : i32
    scf.if %28 {
      %c0_21 = arith.constant 0 : index
      %c0_22 = arith.constant 0 : index
      %29 = vector.load %arg5[%c0_21, %c0_22] : memref<8x128xf32, #tpu.memory_space<vmem>>, vector<8x128xf32>
      %c0_23 = arith.constant 0 : index
      %c0_24 = arith.constant 0 : index
      %c0_25 = arith.constant 0 : index
      %c0_26 = arith.constant 0 : index
      %30 = vector.load %arg4[%c0_23, %c0_24, %c0_25, %c0_26] : memref<1x3x8x128xf32, #tpu.memory_space<vmem>>, vector<1x1x8x128xf32>
      %31 = vector.shape_cast %30 : vector<1x1x8x128xf32> to vector<8x128xf32>
      %32 = vector.shape_cast %29 : vector<8x128xf32> to vector<1x1x8x128xf32>
      tpu.vector_store %arg4[%c0_23, %c0_24, %c0_25, %c0_26], %32 {strides = array<i32>} : memref<1x3x8x128xf32, #tpu.memory_space<vmem>>, vector<1x1x8x128xf32>,
      %c0_27 = arith.constant 0 : index
      %c0_28 = arith.constant 0 : index
      %33 = vector.load %arg6[%c0_27, %c0_28] : memref<8x128xf32, #tpu.memory_space<vmem>>, vector<8x128xf32>
      %c0_29 = arith.constant 0 : index
      %c1 = arith.constant 1 : index
      %c0_30 = arith.constant 0 : index
      %c0_31 = arith.constant 0 : index
      %34 = vector.load %arg4[%c0_29, %c1, %c0_30, %c0_31] : memref<1x3x8x128xf32, #tpu.memory_space<vmem>>, vector<1x1x8x128xf32>
      %35 = vector.shape_cast %34 : vector<1x1x8x128xf32> to vector<8x128xf32>
      %36 = vector.shape_cast %33 : vector<8x128xf32> to vector<1x1x8x128xf32>
      tpu.vector_store %arg4[%c0_29, %c1, %c0_30, %c0_31], %36 {strides = array<i32>} : memref<1x3x8x128xf32, #tpu.memory_space<vmem>>, vector<1x1x8x128xf32>,
      %c0_32 = arith.constant 0 : index
      %c0_33 = arith.constant 0 : index
      %37 = vector.load %arg7[%c0_32, %c0_33] : memref<8x128xf32, #tpu.memory_space<vmem>>, vector<8x128xf32>
      %c0_34 = arith.constant 0 : index
      %c2 = arith.constant 2 : index
      %c0_35 = arith.constant 0 : index
      %c0_36 = arith.constant 0 : index
      %38 = vector.load %arg4[%c0_34, %c2, %c0_35, %c0_36] : memref<1x3x8x128xf32, #tpu.memory_space<vmem>>, vector<1x1x8x128xf32>
      %39 = vector.shape_cast %38 : vector<1x1x8x128xf32> to vector<8x128xf32>
      %40 = vector.shape_cast %37 : vector<8x128xf32> to vector<1x1x8x128xf32>
      tpu.vector_store %arg4[%c0_34, %c2, %c0_35, %c0_36], %40 {strides = array<i32>} : memref<1x3x8x128xf32, #tpu.memory_space<vmem>>, vector<1x1x8x128xf32>,
    } else {
    }
    return
  }
  func.func @transform_0(%arg0: i32, %arg1: i32) -> (i32, i32) {
    %c1_i32 = arith.constant 1 : i32
    %0 = arith.muli %arg0, %c1_i32 : i32
    %1 = arith.addi %0, %arg1 : i32
    %c0_i32 = arith.constant 0 : i32
    %2 = arith.minsi %1, %c0_i32 : i32
    %c0_i32_0 = arith.constant 0 : i32
    %c0_i32_1 = arith.constant 0 : i32
    return %2, %c0_i32_0 : i32, i32
  }
  func.func @transform_1(%arg0: i32, %arg1: i32) -> (i32, i32) {
    %c1_i32 = arith.constant 1 : i32
    %0 = arith.muli %arg0, %c1_i32 : i32
    %1 = arith.addi %0, %arg1 : i32
    %c0_i32 = arith.constant 0 : i32
    %2 = arith.minsi %1, %c0_i32 : i32
    %c0_i32_0 = arith.constant 0 : i32
    %c0_i32_1 = arith.constant 0 : i32
    return %2, %c0_i32_0 : i32, i32
  }
  func.func @transform_2(%arg0: i32, %arg1: i32) -> (i32, i32, i32, i32) {
    %c0_i32 = arith.constant 0 : i32
    %c0_i32_0 = arith.constant 0 : i32
    %c0_i32_1 = arith.constant 0 : i32
    %c0_i32_2 = arith.constant 0 : i32
    return %arg0, %c0_i32, %c0_i32_0, %c0_i32_1 : i32, i32, i32, i32
  }
}

</mosaic_0001>

<bundles_post_ra>
// kernel: tpu_custom_call.1
= control target key start
LH: loop header
LB: loop body
LE: loop exit
PB: predicated region body
PF: predicated region fallthrough
CT: control target
= control target key end

     0   :  { %7 = vsyncpa [#allocation6], 0  ;;  %s293_s0 = inlined_call_operand.hbm [shape: f32[16,128], index: 0, kind: input, shape index: {}]   ;;  %s294_s1 = inlined_call_operand.hbm [shape: f32[16,128], index: 1, kind: input, shape index: {}]   ;;  %s295_s2 = inlined_call_operand.hbm [shape: f32[1,3,8,128], index: 2, kind: output, shape index: {}]  }
   0x1   :  { %8 = vsyncpa [#allocation9], 0 }
   0x2   :  { %9 = vsyncpa [#allocation7], 0  ;;  %s20_s11 = sshll.u32 %s293_s0, 4  ;;  %s255_s12 = smov [#allocation5]   ;;  %s21_s11 = int_to_ptr.hbm [resolvable:$true] %s20_s11 }
   0x3   :  { %s22_s13 = sshll.u32 %s255_s12, 4  ;;  %s39_s16 = sshll.u32 %s294_s1, 4  ;;  %s23_s13 = int_to_ptr.vmem [resolvable:$true] %s22_s13  ;;  %s40_s16 = int_to_ptr.hbm [resolvable:$true] %s39_s16 }
   0x4   :  { %s256_s17 = smov 128   ;;  %s257_s18 = smov 8  }
   0x5   :  { %28 = dma.hbm_to_vmem [thread:$0]  %s21_s11, 256, %s23_s13, [#allocation6], %s256_s17, %s256_s17, %s257_s18  }
   0x6   :  { %s258_s19 = smov [#allocation8]  }
   0x7   :  { %s41_s20 = sshll.u32 %s258_s19, 4  ;;  %s42_s20 = int_to_ptr.vmem [resolvable:$true] %s41_s20 }
   0x8   :  { %47 = dma.hbm_to_vmem [thread:$0]  %s40_s16, 256, %s42_s20, [#allocation9], %s256_s17, %s256_s17, %s257_s18  }
   0x9   :  { %249 = dma.done.wait [#allocation6], 256  }
   0xa   :  { %250 = vsyncadd [#allocation6], 4294967040 }
   0xb   :  { %251 = dma.done.wait [#allocation9], 256  }
   0xc   :  { %252 = vsyncadd [#allocation9], 4294967040  ;;  %v71_v0 = vld [vmem:[#allocation5] sm:$0xff]  ;;  %v72_v1 = vld [vmem:[#allocation5 + $0x8] sm:$0xff]  ;;  %s259_s0 = smov [#allocation10]   ;;  %s144_s23 = sshll.u32 %s295_s2, 4  ;;  %s145_s23 = int_to_ptr.hbm [resolvable:$true] %s144_s23 }
   0xd   :  { %v73_v2 = vld [vmem:[#allocation8] sm:$0xff]  ;;  %v74_v3 = vld [vmem:[#allocation8 + $0x8] sm:$0xff]  ;;  %v162_v4 = vmul.f32 -1.442695, %v71_v0  ;;  %v163_v5 = vmul.f32 -1.442695, %v72_v1 }
   0xe   :  { %v124_v6 = vadd.f32 %v74_v3, %v73_v2  ;;  %s142_s1 = sshll.u32 %s259_s0, 4  ;;  %s143_s1 = int_to_ptr.vmem [resolvable:$true] %s142_s1 }
   0xf   :  { %169 = vpow2.f32 %v162_v4 }
  0x10   :  { %171 = vpow2.f32 %v163_v5  ;;  %137 = vst [vmem:[#allocation10 + $0x10] sm:$0xff] %v124_v6 }
  0x15   :  { %v170_v7 = vpop.eup %169 }
  0x16   :  { %v172_v8 = vpop.eup %171  ;;  %v81_v9 = vadd.f32 1.0, %v170_v7 }
  0x17   :  { %v82_v10 = vadd.f32 1.0, %v172_v8 }
  0x18   :  { %173 = vrcp.f32 %v81_v9  ;;  %vm88_vm0 = vweird.f32 %v81_v9  ;;  %v94_v14 = vand.u32 2147483648, %v81_v9  ;;  %v92_v17 = vand.u32 2147483647, %v81_v9 }
  0x19   :  { %175 = vrcp.f32 %v82_v10  ;;  %v109_v18 = vand.u32 2147483648, %v82_v10  ;;  %vm103_vm2 = vweird.f32 %v82_v10  ;;  %v107_v20 = vand.u32 2147483647, %v82_v10 }
  0x1a   :  { %v95_v22 = vor.u32 1.1754944e-38, %v94_v14  ;;  %vm93_vm5 = vcmp.eq.f32.partialorder %v92_v17, 8.507059e+37 }
  0x1b   :  { %v110_v25 = vor.u32 1.1754944e-38, %v109_v18  ;;  %vm108_vm7 = vcmp.eq.f32.partialorder %v107_v20, 8.507059e+37 }
  0x1e   :  { %v174_v11 = vpop.eup %173 }
  0x1f   :  { %v176_v12 = vpop.eup %175  ;;  %v84_v13 = vmul.f32 %v174_v11, %v81_v9  ;;  %vm89_vm1 = vweird.f32 %v174_v11 }
  0x20   :  { %v99_v15 = vmul.f32 %v176_v12, %v82_v10  ;;  %vm104_vm3 = vweird.f32 %v176_v12  ;;  %vm90_vm4 = vmor %vm88_vm0, %vm89_vm1 }
  0x21   :  { %v85_v16 = vsub.f32 1.0, %v84_v13  ;;  %vm105_vm6 = vmor %vm103_vm2, %vm104_vm3 }
  0x22   :  { %v100_v19 = vsub.f32 1.0, %v99_v15 }
  0x23   :  { %v86_v21 = vmul.f32 %v174_v11, %v85_v16 }
  0x24   :  { %v101_v23 = vmul.f32 %v176_v12, %v100_v19 }
  0x25   :  { %v87_v24 = vadd.f32 %v174_v11, %v86_v21 }
  0x26   :  { %v102_v26 = vadd.f32 %v176_v12, %v101_v23 }
  0x27   :  { %v91_v27 = vsel %vm90_vm4, %v174_v11, %v87_v24 }
  0x28   :  { %v96_v28 = vsel %vm93_vm5, %v95_v22, %v91_v27  ;;  %v106_v29 = vsel %vm105_vm6, %v176_v12, %v102_v26 }
  0x29   :  { %v111_v30 = vsel %vm108_vm7, %v110_v25, %v106_v29  ;;  %v113_v31 = vmul.f32 %v96_v28, %v73_v2 }
  0x2a   :  { %v114_v32 = vmul.f32 %v111_v30, %v74_v3  ;;  %v120_v33 = vadd.f32 %v111_v30, %v96_v28 }
  0x2c   :  { %v116_v34 = vadd.f32 %v114_v32, %v113_v31  ;;  %134 = vst [vmem:[#allocation10 + $0x8] sm:$0xff] %v120_v33 }
  0x2e   :  { %131 = vst [vmem:[#allocation10] sm:$0xff] %v116_v34 }
  0x2f   :  { %150 = dma.vmem_to_hbm [thread:$0]  %s143_s1, 384, %s145_s23, [#allocation7], %s256_s17, %s256_s17, %s257_s18  }
  0x30   :  { %253 = dma.done.wait [#allocation7], 384  }
  0x31   :  { %254 = vsyncadd [#allocation7], 4294966912 }
  0x32   :  { %155 = vsyncpa [#allocation6], 1 }
  0x33   :  { %156 = vsyncpa [#allocation9], 1 }
  0x34   :  { %157 = vsyncpa [#allocation7], 1 }

</bundles_post_ra>
